<compile_context>
chip_gen: v5e
topology: v5e:2x2
jax: 0.10.0
libtpu: 0.0.40
codegen_flags: <defaults>
</compile_context>

<pallas_src>
import jax
import jax.numpy as jnp
from jax import lax
from jax.experimental import pallas as pl
from jax.experimental.pallas import tpu as pltpu  # noqa: F401  (kept for TPU-specific knobs)

B, S = 2, 8        # batch of "texts", tokens per text
V, E = 64, 32      # vocab size, embedder hidden size
P    = 16          # projector output dim


def text_vectorizer_kernel(tokens_ref,            # (B, S) int32
                           table_ref,             # (V, E) f32
                           wpool_ref, bpool_ref,  # (E, E), (1, E)
                           wproj_ref, bproj_ref,  # (E, P), (1, P)
                           out_ref):              # (B, P) f32
    # --- embedder_text: mean-pooled token embeddings via one-hot counts matmul ---
    # counts[b, v] = (1/S) * #{s : tokens[b, s] == v}  ->  mean = counts @ table
    tok = tokens_ref[...]                                          # (B, S) int32
    vid = lax.broadcasted_iota(jnp.int32, (B, S, V), 2)            # vocab id on lanes
    hits = (tok[:, :, None] == vid).astype(jnp.float32)            # (B, S, V)
    counts = jnp.sum(hits, axis=1) * (1.0 / S)                     # (B, V), scale folded in

    mean = jnp.dot(counts, table_ref[...],
                   preferred_element_type=jnp.float32)             # (B, E)

    # --- pooler_output = tanh(mean @ W_pool + b_pool) ---------------------------
    pooled = jnp.tanh(
        jnp.dot(mean, wpool_ref[...], preferred_element_type=jnp.float32)
        + bpool_ref[...]
    )                                                              # (B, E)

    # --- projector_text: linear --------------------------------------------------
    proj = (jnp.dot(pooled, wproj_ref[...], preferred_element_type=jnp.float32)
            + bproj_ref[...])                                      # (B, P)

    out_ref[...] = proj.astype(out_ref.dtype)                      # single dense store


def text_vectorizer(tokens, table, w_pool, b_pool, w_proj, b_proj):
    full = lambda *shape: pl.BlockSpec(shape, lambda i: tuple(0 for _ in shape))
    out = pl.pallas_call(
        text_vectorizer_kernel,
        out_shape=jax.ShapeDtypeStruct((B, P), jnp.float32),
        grid=(1,),                                   # single step: whole batch at once
        in_specs=[
            full(B, S),                              # token ids
            full(V, E),                              # embedding table
            full(E, E),                              # W_pool
            full(1, E),                              # b_pool
            full(E, P),                              # W_proj
            full(1, P),                              # b_proj
        ],
        out_specs=full(B, P),
    )(tokens, table, w_pool, b_pool, w_proj, b_proj)
    # torch.stack of per-sequence (1, hidden) pooler outputs -> (B, 1, P)
    return out.reshape(B, 1, P)


def reference(tokens, table, w_pool, b_pool, w_proj, b_proj):
    emb = table[tokens]                       # (B, S, E)
    mean = emb.mean(axis=1, keepdims=True)    # (B, 1, E)  ~ per-seq embedder output
    pooled = jnp.tanh(mean @ w_pool + b_pool) # (B, 1, E)  ~ pooler_output stacked
    return pooled @ w_proj + b_proj           # (B, 1, P)  ~ projector_text


if __name__ == "__main__":
    key = jax.random.PRNGKey(0)
    k_tok, k_tab, k_wp, k_bp, k_wj, k_bj = jax.random.split(key, 6)

    # "tokenizer(x).input_ids" stand-in: deterministic synthetic token ids.
    tokens = jax.random.randint(k_tok, (B, S), 0, V, dtype=jnp.int32)

    table  = jax.random.normal(k_tab, (V, E), jnp.float32) * 0.02
    w_pool = jax.random.normal(k_wp, (E, E), jnp.float32) * 0.1
    b_pool = jax.random.normal(k_bp, (1, E), jnp.float32) * 0.01
    w_proj = jax.random.normal(k_wj, (E, P), jnp.float32) * 0.1
    b_proj = jax.random.normal(k_bj, (1, P), jnp.float32) * 0.01

    out = text_vectorizer(tokens, table, w_pool, b_pool, w_proj, b_proj)
    out = jax.block_until_ready(out)

    ref = reference(tokens, table, w_pool, b_pool, w_proj, b_proj)
    assert out.shape == (B, 1, P)
    assert jnp.allclose(out, ref, atol=1e-5, rtol=1e-5), "mismatch vs reference"

    print("KERNEL_OK")
</pallas_src>

<mosaic_0001>
module attributes {stable_mosaic.version = 11 : i64} {
  func.func @text_vectorizer_kernel(%arg0: i32, %arg1: memref<2x8xi32, #tpu.memory_space<vmem>>, %arg2: memref<64x32xf32, #tpu.memory_space<vmem>>, %arg3: memref<32x32xf32, #tpu.memory_space<vmem>>, %arg4: memref<1x32xf32, #tpu.memory_space<vmem>>, %arg5: memref<32x16xf32, #tpu.memory_space<vmem>>, %arg6: memref<1x16xf32, #tpu.memory_space<vmem>>, %arg7: memref<2x16xf32, #tpu.memory_space<vmem>>) attributes {dimension_semantics = [#tpu.dimension_semantics<arbitrary>], iteration_bounds = array<i64: 1>, scalar_prefetch = 0 : i64, scratch_operands = 0 : i64, tpu.core_type = #tpu.core_type<tc>, window_params = [{pipeline_mode = #tpu.pipeline_mode<synchronous>, transform_indices = @transform_0, window_bounds = array<i64: 2, 8>}, {pipeline_mode = #tpu.pipeline_mode<synchronous>, transform_indices = @transform_1, window_bounds = array<i64: 64, 32>}, {pipeline_mode = #tpu.pipeline_mode<synchronous>, transform_indices = @transform_2, window_bounds = array<i64: 32, 32>}, {pipeline_mode = #tpu.pipeline_mode<synchronous>, transform_indices = @transform_3, window_bounds = array<i64: 1, 32>}, {pipeline_mode = #tpu.pipeline_mode<synchronous>, transform_indices = @transform_4, window_bounds = array<i64: 32, 16>}, {pipeline_mode = #tpu.pipeline_mode<synchronous>, transform_indices = @transform_5, window_bounds = array<i64: 1, 16>}, {pipeline_mode = #tpu.pipeline_mode<synchronous>, transform_indices = @transform_6, window_bounds = array<i64: 2, 16>}]} {
    %c0 = arith.constant 0 : index
    %c0_0 = arith.constant 0 : index
    %0 = vector.load %arg1[%c0, %c0_0] : memref<2x8xi32, #tpu.memory_space<vmem>>, vector<2x8xi32>
    %1 = tpu.iota {dimensions = array<i32: 2>} : vector<2x8x64xi32>
    %2 = vector.shape_cast %0 : vector<2x8xi32> to vector<2x8x1xi32>
    %3 = vector.broadcast %2 : vector<2x8x1xi32> to vector<2x8x64xi32>
    %4 = arith.cmpi eq, %3, %1 : vector<2x8x64xi32>
    %5 = arith.extui %4 : vector<2x8x64xi1> to vector<2x8x64xi32>
    %6 = arith.sitofp %5 : vector<2x8x64xi32> to vector<2x8x64xf32>
    %cst = arith.constant dense<0.000000e+00> : vector<2x64xf32>
    %7 = vector.multi_reduction <add>, %6, %cst [1] : vector<2x8x64xf32> to vector<2x64xf32>
    %cst_1 = arith.constant 1.250000e-01 : f32
    %8 = vector.broadcast %cst_1 : f32 to vector<2x64xf32>
    %9 = arith.mulf %7, %8 : vector<2x64xf32>
    %c0_2 = arith.constant 0 : index
    %c0_3 = arith.constant 0 : index
    %10 = vector.load %arg2[%c0_2, %c0_3] : memref<64x32xf32, #tpu.memory_space<vmem>>, vector<64x32xf32>
    %cst_4 = arith.constant dense<0.000000e+00> : vector<2x32xf32>
    %11 = tpu.matmul %9, %10, %cst_4 {dimension_numbers = #tpu.dot_dimension_numbers<[1], [0], [0], [1], [0, 0, 1, 1], [], []>} : vector<2x64xf32>, vector<64x32xf32>, vector<2x32xf32> -> vector<2x32xf32>
    %c0_5 = arith.constant 0 : index
    %c0_6 = arith.constant 0 : index
    %12 = vector.load %arg3[%c0_5, %c0_6] : memref<32x32xf32, #tpu.memory_space<vmem>>, vector<32x32xf32>
    %cst_7 = arith.constant dense<0.000000e+00> : vector<2x32xf32>
    %13 = tpu.matmul %11, %12, %cst_7 {dimension_numbers = #tpu.dot_dimension_numbers<[1], [0], [0], [1], [0, 0, 1, 1], [], []>} : vector<2x32xf32>, vector<32x32xf32>, vector<2x32xf32> -> vector<2x32xf32>
    %c0_8 = arith.constant 0 : index
    %c0_9 = arith.constant 0 : index
    %14 = vector.load %arg4[%c0_8, %c0_9] : memref<1x32xf32, #tpu.memory_space<vmem>>, vector<1x32xf32>
    %15 = vector.broadcast %14 : vector<1x32xf32> to vector<2x32xf32>
    %16 = arith.addf %13, %15 : vector<2x32xf32>
    %17 = math.tanh %16 : vector<2x32xf32>
    %c0_10 = arith.constant 0 : index
    %c0_11 = arith.constant 0 : index
    %18 = vector.load %arg5[%c0_10, %c0_11] : memref<32x16xf32, #tpu.memory_space<vmem>>, vector<32x16xf32>
    %cst_12 = arith.constant dense<0.000000e+00> : vector<2x16xf32>
    %19 = tpu.matmul %17, %18, %cst_12 {dimension_numbers = #tpu.dot_dimension_numbers<[1], [0], [0], [1], [0, 0, 1, 1], [], []>} : vector<2x32xf32>, vector<32x16xf32>, vector<2x16xf32> -> vector<2x16xf32>
    %c0_13 = arith.constant 0 : index
    %c0_14 = arith.constant 0 : index
    %20 = vector.load %arg6[%c0_13, %c0_14] : memref<1x16xf32, #tpu.memory_space<vmem>>, vector<1x16xf32>
    %21 = vector.broadcast %20 : vector<1x16xf32> to vector<2x16xf32>
    %22 = arith.addf %19, %21 : vector<2x16xf32>
    %c0_15 = arith.constant 0 : index
    %c0_16 = arith.constant 0 : index
    %23 = vector.load %arg7[%c0_15, %c0_16] : memref<2x16xf32, #tpu.memory_space<vmem>>, vector<2x16xf32>
    tpu.vector_store %arg7[%c0_15, %c0_16], %22 {strides = array<i32>} : memref<2x16xf32, #tpu.memory_space<vmem>>, vector<2x16xf32>,
    return
  }
  func.func @transform_0(%arg0: i32) -> (i32, i32) {
    %c0_i32 = arith.constant 0 : i32
    %c0_i32_0 = arith.constant 0 : i32
    %c0_i32_1 = arith.constant 0 : i32
    return %c0_i32, %c0_i32_0 : i32, i32
  }
  func.func @transform_1(%arg0: i32) -> (i32, i32) {
    %c0_i32 = arith.constant 0 : i32
    %c0_i32_0 = arith.constant 0 : i32
    %c0_i32_1 = arith.constant 0 : i32
    return %c0_i32, %c0_i32_0 : i32, i32
  }
  func.func @transform_2(%arg0: i32) -> (i32, i32) {
    %c0_i32 = arith.constant 0 : i32
    %c0_i32_0 = arith.constant 0 : i32
    %c0_i32_1 = arith.constant 0 : i32
    return %c0_i32, %c0_i32_0 : i32, i32
  }
  func.func @transform_3(%arg0: i32) -> (i32, i32) {
    %c0_i32 = arith.constant 0 : i32
    %c0_i32_0 = arith.constant 0 : i32
    %c0_i32_1 = arith.constant 0 : i32
    return %c0_i32, %c0_i32_0 : i32, i32
  }
  func.func @transform_4(%arg0: i32) -> (i32, i32) {
    %c0_i32 = arith.constant 0 : i32
    %c0_i32_0 = arith.constant 0 : i32
    %c0_i32_1 = arith.constant 0 : i32
    return %c0_i32, %c0_i32_0 : i32, i32
  }
  func.func @transform_5(%arg0: i32) -> (i32, i32) {
    %c0_i32 = arith.constant 0 : i32
    %c0_i32_0 = arith.constant 0 : i32
    %c0_i32_1 = arith.constant 0 : i32
    return %c0_i32, %c0_i32_0 : i32, i32
  }
  func.func @transform_6(%arg0: i32) -> (i32, i32) {
    %c0_i32 = arith.constant 0 : i32
    %c0_i32_0 = arith.constant 0 : i32
    %c0_i32_1 = arith.constant 0 : i32
    return %c0_i32, %c0_i32_0 : i32, i32
  }
}

</mosaic_0001>

<bundles_post_ra>
// kernel: tpu_custom_call.1
= control target key start
LH: loop header
LB: loop body
LE: loop exit
PB: predicated region body
PF: predicated region fallthrough
CT: control target
= control target key end

     0   :  { %v25_v0 = vlaneseq  ;;  %s320_s0 = inlined_call_operand.vmem [shape: s32[2,8], index: 0, kind: input, shape index: {}]   ;;  %s321_s1 = inlined_call_operand.vmem [shape: f32[64,32], index: 1, kind: input, shape index: {}]   ;;  %s322_s2 = inlined_call_operand.vmem [shape: f32[32,32], index: 2, kind: input, shape index: {}]   ;;  %s323_s3 = inlined_call_operand.vmem [shape: f32[1,32], index: 3, kind: input, shape index: {}]   ;;  %s324_s4 = inlined_call_operand.vmem [shape: f32[32,16], index: 4, kind: input, shape index: {}]   ;;  %s325_s5 = inlined_call_operand.vmem [shape: f32[1,16], index: 5, kind: input, shape index: {}]   ;;  %s326_s6 = inlined_call_operand.hbm [shape: f32[2,16], index: 6, kind: output, shape index: {}]  }
   0x1   :  { %11 = vsyncpa [#allocation3], 0  ;;  %v24_v2 = vld [vmem:[%s320_s0] sm:$0x3]  ;;  %v71_v5 = vld [vmem:[%s321_s1 + $0x38] sm:$0xff]  ;;  %vm47_vm0 = vcmask 523264  }
   0x2   :  { %v29_v1 = vshrl.u32 %v25_v0, 7  ;;  %v27_v3 = vperm.slane %v24_v2, 0  ;;  %v34_v4 = vperm.slane %v24_v2, 1  ;;  %v70_v6 = vld [vmem:[%s321_s1 + $0x30] sm:$0xff]  ;;  %86 = vmatpush.msra.mxu0 %v71_v5  ;;  %v69_v7 = vld [vmem:[%s321_s1 + $0x28] sm:$0xff]  ;;  %v68_v8 = vld [vmem:[%s321_s1 + $0x20] sm:$0xff] }
   0x3   :  { %v67_v9 = vld [vmem:[%s321_s1 + $0x18] sm:$0xff]  ;;  %v66_v10 = vld [vmem:[%s321_s1 + $0x10] sm:$0xff]  ;;  %v65_v11 = vld [vmem:[%s321_s1 + $0x8] sm:$0xff]  ;;  %v26_v15 = vand.u32 127, %v25_v0  ;;  %v218_v18 = vmov 0.0   ;;  %vm74_vm3 = vcmask 1041409  }
   0x4   :  { %187 = vset.pattern.permute.xlu0 %v29_v1  ;;  %87 = vmatpush.msra.mxu0 %v70_v6  ;;  %v64_v12 = vld [vmem:[%s321_s1] sm:$0xff]  ;;  %v101_v13 = vld [vmem:[%s322_s2 + $0x18] sm:$0xff]  ;;  %v100_v14 = vld [vmem:[%s322_s2 + $0x10] sm:$0xff]  ;;  %vm106_vm4 = vcmask 261120   ;;  %s219_s7 = smov [#allocation2]   ;;  %s171_s10 = sshll.u32 %s326_s6, 4  ;;  %s172_s10 = int_to_ptr.hbm [resolvable:$true] %s171_s10 }
   0x5   :  { %122 = vmatpush.msra.mxu1 %v101_v13  ;;  %v99_v16 = vld [vmem:[%s322_s2 + $0x8] sm:$0xff]  ;;  %v98_v39 = vld [vmem:[%s322_s2] sm:$0xff]  ;;  %v134_v41 = vld [vmem:[%s324_s4 + $0x18] sm:$0xff]  ;;  %s169_s8 = sshll.u32 %s219_s7, 4  ;;  %vm162_vm5 = vcmask 123904   ;;  %s170_s8 = int_to_ptr.vmem [resolvable:$true] %s169_s8 }
   0x6   :  { %88 = vmatpush.msra.mxu0 %v69_v7  ;;  %154 = vmatpush.msra.mxu2 %v134_v41  ;;  %v133_v42 = vld [vmem:[%s324_s4 + $0x10] sm:$0xff]  ;;  %v132_v43 = vld [vmem:[%s324_s4 + $0x8] sm:$0xff]  ;;  %v131_v44 = vld [vmem:[%s324_s4] sm:$0xff] }
   0x7   :  { %123 = vmatpush.msra.mxu1 %v100_v14  ;;  %v188_v45 = vld [vmem:[%s323_s3] ss:$0 sm:$0xff] }
   0x8   :  { %89 = vmatpush.msra.mxu0 %v68_v8  ;;  %155 = vmatpush.msra.mxu2 %v133_v42  ;;  %v189_v49 = vld [vmem:[%s325_s5] ss:$0 sm:$0xff] }
   0x9   :  { %124 = vmatpush.msra.mxu1 %v99_v16 }
   0xa   :  { %90 = vmatpush.msra.mxu0 %v67_v9  ;;  %156 = vmatpush.msra.mxu2 %v132_v43 }
   0xb   :  { %125 = vmatpush.msra.mxu1 %v98_v39 }
   0xc   :  { %32 = vperm.xlu0 %187, %v27_v3   ;;  %91 = vmatpush.msra.mxu0 %v66_v10 }
   0xd   :  { %157 = vmatpush.msra.mxu2 %v131_v44 }
   0xe   :  { %92 = vmatpush.msra.mxu0 %v65_v11 }
  0x10   :  { %93 = vmatpush.msra.mxu0 %v64_v12 }
  0x14   :  { %39 = vperm.xlu0 %187, %v34_v4  }
  0x7e   :  { %v33_v17 = vpop.permute.xlu0 %32 }
  0x7f   :  { %vm41_vm1 = vcmp.eq.s32.totalorder %v33_v17, %v26_v15 }
  0x80   :  { %v180_v19 = vsel %vm41_vm1, 1.0, %v218_v18 }
  0x81   :  { %v48_v20 = vsel %vm47_vm0, %v180_v19, 0.0 }
  0x82   :  { %v49_v21 = vrot.slane %v48_v20, 4 }
  0x84   :  { %v50_v22 = vadd.f32 %v49_v21, %v48_v20 }
  0x86   :  { %v40_v23 = vpop.permute.xlu0 %39  ;;  %v51_v24 = vrot.slane %v50_v22, 2 }
  0x87   :  { %vm42_vm2 = vcmp.eq.s32.totalorder %v40_v23, %v26_v15 }
  0x88   :  { %v181_v25 = vsel %vm42_vm2, 1.0, %v218_v18  ;;  %v52_v27 = vadd.f32 %v51_v24, %v50_v22 }
  0x89   :  { %v55_v26 = vsel %vm47_vm0, %v181_v25, 0.0 }
  0x8a   :  { %v56_v28 = vrot.slane %v55_v26, 4  ;;  %v53_v30 = vrot.slane %v52_v27, 1 }
  0x8c   :  { %v57_v29 = vadd.f32 %v56_v28, %v55_v26  ;;  %v54_v33 = vadd.f32 %v53_v30, %v52_v27 }
  0x8e   :  { %v58_v31 = vrot.slane %v57_v29, 2  ;;  %v62_v36 = vmul.f32 0.125, %v54_v33 }
  0x90   :  { %v59_v32 = vadd.f32 %v58_v31, %v57_v29 }
  0x92   :  { %v60_v34 = vrot.slane %v59_v32, 1 }
  0x94   :  { %v61_v35 = vadd.f32 %v60_v34, %v59_v32 }
  0x96   :  { %v63_v37 = vmul.f32 0.125, %v61_v35 }
  0x98   :  { %v75_v38 = vsel %vm74_vm3, %v63_v37, %v62_v36 }
  0x99   :  { %182 = vmatmul.msk.f32.vlgmr.msra.gmra.mxu0 %vm47_vm0, %v75_v38 }
 0x116   :  { %v95_v40 = vpop.f32.mrf.mxu0 }
 0x117   :  { %183 = vmatmul.msk.f32.vlgmr.msra.gmra.mxu1 %vm106_vm4, %v95_v40 }
 0x194   :  { %v127_v46 = vpop.f32.mrf.mxu1 }
 0x195   :  { %v128_v47 = vadd.f32 %v188_v45, %v127_v46 }
 0x197   :  { %190 = vtanh.f32 %v128_v47 }
 0x19d   :  { %v191_v48 = vpop.eup %190 }
 0x19e   :  { %184 = vmatmul.msk.f32.vlgmr.msra.gmra.mxu2 %vm106_vm4, %v191_v48 }
 0x221   :  { %v159_v50 = vpop.f32.mrf.mxu2 }
 0x222   :  { %v160_v51 = vadd.f32 %v189_v49, %v159_v50 }
 0x224   :  { %163 = vst.msk [vmem:[#allocation2] sm:$0x3] %vm162_vm5, %v160_v51 }
 0x225   :  { %174 = dma.vmem_to_hbm [thread:$0]  %s170_s8, 32, %s172_s10, [#allocation3]  }
 0x226   :  { %216 = dma.done.wait [#allocation3], 32  }
 0x227   :  { %217 = vsyncadd [#allocation3], 4294967264 }
 0x228   :  { %179 = vsyncpa [#allocation3], 1 }

</bundles_post_ra>
